<compile_context>
chip_gen: v5e
topology: v5e:2x2
jax: 0.10.0
libtpu: 0.0.40
codegen_flags: <defaults>
</compile_context>

<pallas_src>
import jax
import jax.numpy as jnp
from jax.experimental import pallas as pl
from jax.experimental.pallas import tpu as pltpu


def _conv1x1x1_kernel(w_ref, b_ref, x_ref, o_ref):
    # w_ref: (Cout, Cin) f32 in SMEM      b_ref: (Cout,) f32 in SMEM
    # x_ref: (Cin, tSr, L) in VMEM        o_ref: (Cout, tSr, L) in VMEM
    cout, cin = w_ref.shape
    # Hoist the channel loads out of the co loop: each input channel is read
    # from VMEM exactly once and reused for all Cout accumulators.
    xs = [x_ref[ci] for ci in range(cin)]
    for co in range(cout):
        acc = xs[0] * w_ref[co, 0] + b_ref[co]
        for ci in range(1, cin):
            acc = acc + xs[ci] * w_ref[co, ci]
        o_ref[co] = acc.astype(o_ref.dtype)


def _choose_layout(S, lane_tile):
    """Pick (L, Sr) with Sr * L >= S and L a multiple of 128.

    Preference order:
      1. exact factorization with Sr a multiple of 8 (dense sublanes, no pad),
         largest such L <= lane_tile;
      2. exact factorization with Sr <= 8 (tiny volume; padding buys nothing);
      3. pad: L = 128, Sr = ceil(S/128) rounded up to a multiple of 8 so
         vregs stay fully dense and stores unmasked (pad < 8*128 elements
         beyond the ceiling).
    """
    lane_tile = max(128, (lane_tile // 128) * 128)
    for L in range(lane_tile, 0, -128):
        if S % L == 0 and (S // L) % 8 == 0:
            return L, S // L
    for L in range(lane_tile, 0, -128):
        if S % L == 0 and S // L <= 8:
            return L, S // L
    L = 128
    Sr = -(-S // L)                  # ceil
    Sr = ((Sr + 7) // 8) * 8         # multiple of 8 -> dense sublanes
    return L, Sr


def _pick_row_tile(Sr, L, N, cin, cout, row_tile, itemsize):
    """Per-step sublane tile tSr.

    Targets >= ~8 total grid steps (and >= 2 spatial steps when N == 1 so both
    v7x TensorCores get independent work) while keeping each step's HBM
    traffic >= ~2 MiB so the fixed per-step overhead stays small.  The result
    is always a multiple of 8 or equal to Sr (Mosaic (8,128) tiling rule).
    """
    if Sr <= 8 or Sr % 8 != 0:
        return Sr                    # single full-dim block (tiny volume)
    spatial_steps = max(2, -(-8 // max(1, N)))
    tsr = Sr // spatial_steps
    bytes_per_row = (cin + cout) * L * itemsize
    min_rows = -(-(2 * 1024 * 1024) // bytes_per_row)
    tsr = max(tsr, min_rows, 8)
    tsr = (tsr // 8) * 8
    tsr = max(8, min(tsr, row_tile, Sr))
    return tsr


def conv_disp_forward(x, weight, bias, *, lane_tile=512, row_tile=512):
    """Forward of conv_disp with kernel_size=1.

    x:      (N, Cin, D, H, W)  float32 (NCDHW, PyTorch convention)
    weight: (Cout, Cin, 1, 1, 1)
    bias:   (Cout,)
    returns (N, Cout, D, H, W)
    """
    N, Cin, D, H, W = x.shape
    Cout = weight.shape[0]
    S = D * H * W

    L, Sr = _choose_layout(S, lane_tile)
    S_pad = L * Sr
    itemsize = jnp.dtype(x.dtype).itemsize
    tSr = _pick_row_tile(Sr, L, N, Cin, Cout, row_tile, itemsize)

    x3 = x.reshape(N, Cin, S)                       # free (row-major) view
    if S_pad != S:
        x3 = jnp.pad(x3, ((0, 0), (0, 0), (0, S_pad - S)))
    x4 = x3.reshape(N, Cin, Sr, L)

    w2 = weight.reshape(Cout, Cin).astype(jnp.float32)   # scalar weights
    b1 = bias.reshape(Cout).astype(jnp.float32)

    grid = (N, pl.cdiv(Sr, tSr))

    # Double-buffered per-step tiles + headroom; well inside v7x's 64 MiB.
    tile_bytes = (Cin + Cout) * tSr * L * itemsize
    vmem_limit = int(min(56 * 1024 * 1024,
                         max(16 * 1024 * 1024,
                             2 * tile_bytes + 8 * 1024 * 1024)))

    out4 = pl.pallas_call(
        _conv1x1x1_kernel,
        out_shape=jax.ShapeDtypeStruct((N, Cout, Sr, L), x.dtype),
        grid_spec=pltpu.PrefetchScalarGridSpec(
            num_scalar_prefetch=0,
            grid=grid,
            in_specs=[
                pl.BlockSpec(memory_space=pltpu.MemorySpace.SMEM),   # weights
                pl.BlockSpec(memory_space=pltpu.MemorySpace.SMEM),   # bias
                pl.BlockSpec((pl.Squeezed(), Cin, tSr, L),
                             lambda n, s: (n, 0, s, 0)),             # x tile
            ],
            out_specs=pl.BlockSpec((pl.Squeezed(), Cout, tSr, L),
                                   lambda n, s: (n, 0, s, 0)),
        ),
        compiler_params=pltpu.CompilerParams(
            dimension_semantics=("parallel", "parallel"),
            vmem_limit_bytes=vmem_limit,
        ),
    )(w2, b1, x4)

    out3 = out4.reshape(N, Cout, S_pad)
    if S_pad != S:
        out3 = out3[:, :, :S]
    return out3.reshape(N, Cout, D, H, W)


# TODO(synk): kernel_size > 1 (padded 3D conv) not implemented; module default
# (kernel_size=1, padding=0) is covered exactly.


def _reference(x, weight, bias):
    Cout = weight.shape[0]
    return (jnp.einsum("ncdhw,oc->nodhw", x, weight.reshape(Cout, -1))
            + bias.reshape(1, Cout, 1, 1, 1))


if __name__ == "__main__":
    key = jax.random.PRNGKey(0)
    k_x, k_w, k_x2, k_w2, k_b2 = jax.random.split(key, 5)

    # --- Check 1: module-default init, shapes consistent with the module -----
    # batch=2, inChan=4, D=4, H=W=8  (S=256, exact-division layout path).
    N, Cin, D, H, W = 2, 4, 4, 8, 8
    Cout = 3
    x = jax.random.normal(k_x, (N, Cin, D, H, W), dtype=jnp.float32)
    # Module __init__: weight ~ Normal(0, 1e-5), bias = 0.
    weight = 1e-5 * jax.random.normal(k_w, (Cout, Cin, 1, 1, 1), dtype=jnp.float32)
    bias = jnp.zeros((Cout,), dtype=jnp.float32)

    out = jax.block_until_ready(conv_disp_forward(x, weight, bias))
    assert out.shape == (N, Cout, D, H, W), out.shape
    ref = _reference(x, weight, bias)
    assert jnp.allclose(out, ref, atol=1e-6, rtol=1e-5)

    # --- Check 2: ragged spatial (S=105, padded layout path), O(1) params ----
    N2, D2, H2, W2 = 1, 3, 5, 7
    x2 = jax.random.normal(k_x2, (N2, Cin, D2, H2, W2), dtype=jnp.float32)
    weight2 = jax.random.normal(k_w2, (Cout, Cin, 1, 1, 1), dtype=jnp.float32)
    bias2 = jax.random.normal(k_b2, (Cout,), dtype=jnp.float32)

    out2 = jax.block_until_ready(conv_disp_forward(x2, weight2, bias2))
    assert out2.shape == (N2, Cout, D2, H2, W2), out2.shape
    ref2 = _reference(x2, weight2, bias2)
    assert jnp.allclose(out2, ref2, atol=1e-5, rtol=1e-5)

    print("KERNEL_OK")
</pallas_src>

<mosaic_0001>
module attributes {stable_mosaic.version = 11 : i64} {
  func.func @_conv1x1x1_kernel(%arg0: i32, %arg1: i32, %arg2: memref<3x4xf32, #tpu.memory_space<smem>>, %arg3: memref<3xf32, #tpu.memory_space<smem>>, %arg4: memref<1x4x1x256xf32, #tpu.memory_space<vmem>>, %arg5: memref<1x3x1x256xf32, #tpu.memory_space<vmem>>) attributes {dimension_semantics = [#tpu.dimension_semantics<parallel>, #tpu.dimension_semantics<parallel>], iteration_bounds = array<i64: 2, 1>, scalar_prefetch = 0 : i64, scratch_operands = 0 : i64, tpu.core_type = #tpu.core_type<tc>, window_params = [{transform_indices = @transform_0, window_bounds = array<i64: 3, 4>}, {transform_indices = @transform_1, window_bounds = array<i64: 3>}, {transform_indices = @transform_2, window_bounds = array<i64: 1, 4, 1, 256>}, {transform_indices = @transform_3, window_bounds = array<i64: 1, 3, 1, 256>}]} {
    %c0 = arith.constant 0 : index
    %c0_0 = arith.constant 0 : index
    %c0_1 = arith.constant 0 : index
    %c0_2 = arith.constant 0 : index
    %0 = vector.load %arg4[%c0, %c0_0, %c0_1, %c0_2] : memref<1x4x1x256xf32, #tpu.memory_space<vmem>>, vector<1x1x1x256xf32>
    %1 = vector.shape_cast %0 : vector<1x1x1x256xf32> to vector<1x256xf32>
    %c0_3 = arith.constant 0 : index
    %c1 = arith.constant 1 : index
    %c0_4 = arith.constant 0 : index
    %c0_5 = arith.constant 0 : index
    %2 = vector.load %arg4[%c0_3, %c1, %c0_4, %c0_5] : memref<1x4x1x256xf32, #tpu.memory_space<vmem>>, vector<1x1x1x256xf32>
    %3 = vector.shape_cast %2 : vector<1x1x1x256xf32> to vector<1x256xf32>
    %c0_6 = arith.constant 0 : index
    %c2 = arith.constant 2 : index
    %c0_7 = arith.constant 0 : index
    %c0_8 = arith.constant 0 : index
    %4 = vector.load %arg4[%c0_6, %c2, %c0_7, %c0_8] : memref<1x4x1x256xf32, #tpu.memory_space<vmem>>, vector<1x1x1x256xf32>
    %5 = vector.shape_cast %4 : vector<1x1x1x256xf32> to vector<1x256xf32>
    %c0_9 = arith.constant 0 : index
    %c3 = arith.constant 3 : index
    %c0_10 = arith.constant 0 : index
    %c0_11 = arith.constant 0 : index
    %6 = vector.load %arg4[%c0_9, %c3, %c0_10, %c0_11] : memref<1x4x1x256xf32, #tpu.memory_space<vmem>>, vector<1x1x1x256xf32>
    %7 = vector.shape_cast %6 : vector<1x1x1x256xf32> to vector<1x256xf32>
    %c0_12 = arith.constant 0 : index
    %c0_13 = arith.constant 0 : index
    %8 = memref.load %arg2[%c0_12, %c0_13] : memref<3x4xf32, #tpu.memory_space<smem>>
    %9 = vector.broadcast %8 : f32 to vector<1x256xf32>
    %10 = arith.mulf %1, %9 : vector<1x256xf32>
    %c0_14 = arith.constant 0 : index
    %11 = memref.load %arg3[%c0_14] : memref<3xf32, #tpu.memory_space<smem>>
    %12 = vector.broadcast %11 : f32 to vector<1x256xf32>
    %13 = arith.addf %10, %12 : vector<1x256xf32>
    %c0_15 = arith.constant 0 : index
    %c1_16 = arith.constant 1 : index
    %14 = memref.load %arg2[%c0_15, %c1_16] : memref<3x4xf32, #tpu.memory_space<smem>>
    %15 = vector.broadcast %14 : f32 to vector<1x256xf32>
    %16 = arith.mulf %3, %15 : vector<1x256xf32>
    %17 = arith.addf %13, %16 : vector<1x256xf32>
    %c0_17 = arith.constant 0 : index
    %c2_18 = arith.constant 2 : index
    %18 = memref.load %arg2[%c0_17, %c2_18] : memref<3x4xf32, #tpu.memory_space<smem>>
    %19 = vector.broadcast %18 : f32 to vector<1x256xf32>
    %20 = arith.mulf %5, %19 : vector<1x256xf32>
    %21 = arith.addf %17, %20 : vector<1x256xf32>
    %c0_19 = arith.constant 0 : index
    %c3_20 = arith.constant 3 : index
    %22 = memref.load %arg2[%c0_19, %c3_20] : memref<3x4xf32, #tpu.memory_space<smem>>
    %23 = vector.broadcast %22 : f32 to vector<1x256xf32>
    %24 = arith.mulf %7, %23 : vector<1x256xf32>
    %25 = arith.addf %21, %24 : vector<1x256xf32>
    %c0_21 = arith.constant 0 : index
    %c0_22 = arith.constant 0 : index
    %c0_23 = arith.constant 0 : index
    %c0_24 = arith.constant 0 : index
    %26 = vector.load %arg5[%c0_21, %c0_22, %c0_23, %c0_24] : memref<1x3x1x256xf32, #tpu.memory_space<vmem>>, vector<1x1x1x256xf32>
    %27 = vector.shape_cast %26 : vector<1x1x1x256xf32> to vector<1x256xf32>
    %28 = vector.shape_cast %25 : vector<1x256xf32> to vector<1x1x1x256xf32>
    tpu.vector_store %arg5[%c0_21, %c0_22, %c0_23, %c0_24], %28 {strides = array<i32>} : memref<1x3x1x256xf32, #tpu.memory_space<vmem>>, vector<1x1x1x256xf32>,
    %c1_25 = arith.constant 1 : index
    %c0_26 = arith.constant 0 : index
    %29 = memref.load %arg2[%c1_25, %c0_26] : memref<3x4xf32, #tpu.memory_space<smem>>
    %30 = vector.broadcast %29 : f32 to vector<1x256xf32>
    %31 = arith.mulf %1, %30 : vector<1x256xf32>
    %c1_27 = arith.constant 1 : index
    %32 = memref.load %arg3[%c1_27] : memref<3xf32, #tpu.memory_space<smem>>
    %33 = vector.broadcast %32 : f32 to vector<1x256xf32>
    %34 = arith.addf %31, %33 : vector<1x256xf32>
    %c1_28 = arith.constant 1 : index
    %c1_29 = arith.constant 1 : index
    %35 = memref.load %arg2[%c1_28, %c1_29] : memref<3x4xf32, #tpu.memory_space<smem>>
    %36 = vector.broadcast %35 : f32 to vector<1x256xf32>
    %37 = arith.mulf %3, %36 : vector<1x256xf32>
    %38 = arith.addf %34, %37 : vector<1x256xf32>
    %c1_30 = arith.constant 1 : index
    %c2_31 = arith.constant 2 : index
    %39 = memref.load %arg2[%c1_30, %c2_31] : memref<3x4xf32, #tpu.memory_space<smem>>
    %40 = vector.broadcast %39 : f32 to vector<1x256xf32>
    %41 = arith.mulf %5, %40 : vector<1x256xf32>
    %42 = arith.addf %38, %41 : vector<1x256xf32>
    %c1_32 = arith.constant 1 : index
    %c3_33 = arith.constant 3 : index
    %43 = memref.load %arg2[%c1_32, %c3_33] : memref<3x4xf32, #tpu.memory_space<smem>>
    %44 = vector.broadcast %43 : f32 to vector<1x256xf32>
    %45 = arith.mulf %7, %44 : vector<1x256xf32>
    %46 = arith.addf %42, %45 : vector<1x256xf32>
    %c0_34 = arith.constant 0 : index
    %c1_35 = arith.constant 1 : index
    %c0_36 = arith.constant 0 : index
    %c0_37 = arith.constant 0 : index
    %47 = vector.load %arg5[%c0_34, %c1_35, %c0_36, %c0_37] : memref<1x3x1x256xf32, #tpu.memory_space<vmem>>, vector<1x1x1x256xf32>
    %48 = vector.shape_cast %47 : vector<1x1x1x256xf32> to vector<1x256xf32>
    %49 = vector.shape_cast %46 : vector<1x256xf32> to vector<1x1x1x256xf32>
    tpu.vector_store %arg5[%c0_34, %c1_35, %c0_36, %c0_37], %49 {strides = array<i32>} : memref<1x3x1x256xf32, #tpu.memory_space<vmem>>, vector<1x1x1x256xf32>,
    %c2_38 = arith.constant 2 : index
    %c0_39 = arith.constant 0 : index
    %50 = memref.load %arg2[%c2_38, %c0_39] : memref<3x4xf32, #tpu.memory_space<smem>>
    %51 = vector.broadcast %50 : f32 to vector<1x256xf32>
    %52 = arith.mulf %1, %51 : vector<1x256xf32>
    %c2_40 = arith.constant 2 : index
    %53 = memref.load %arg3[%c2_40] : memref<3xf32, #tpu.memory_space<smem>>
    %54 = vector.broadcast %53 : f32 to vector<1x256xf32>
    %55 = arith.addf %52, %54 : vector<1x256xf32>
    %c2_41 = arith.constant 2 : index
    %c1_42 = arith.constant 1 : index
    %56 = memref.load %arg2[%c2_41, %c1_42] : memref<3x4xf32, #tpu.memory_space<smem>>
    %57 = vector.broadcast %56 : f32 to vector<1x256xf32>
    %58 = arith.mulf %3, %57 : vector<1x256xf32>
    %59 = arith.addf %55, %58 : vector<1x256xf32>
    %c2_43 = arith.constant 2 : index
    %c2_44 = arith.constant 2 : index
    %60 = memref.load %arg2[%c2_43, %c2_44] : memref<3x4xf32, #tpu.memory_space<smem>>
    %61 = vector.broadcast %60 : f32 to vector<1x256xf32>
    %62 = arith.mulf %5, %61 : vector<1x256xf32>
    %63 = arith.addf %59, %62 : vector<1x256xf32>
    %c2_45 = arith.constant 2 : index
    %c3_46 = arith.constant 3 : index
    %64 = memref.load %arg2[%c2_45, %c3_46] : memref<3x4xf32, #tpu.memory_space<smem>>
    %65 = vector.broadcast %64 : f32 to vector<1x256xf32>
    %66 = arith.mulf %7, %65 : vector<1x256xf32>
    %67 = arith.addf %63, %66 : vector<1x256xf32>
    %c0_47 = arith.constant 0 : index
    %c2_48 = arith.constant 2 : index
    %c0_49 = arith.constant 0 : index
    %c0_50 = arith.constant 0 : index
    %68 = vector.load %arg5[%c0_47, %c2_48, %c0_49, %c0_50] : memref<1x3x1x256xf32, #tpu.memory_space<vmem>>, vector<1x1x1x256xf32>
    %69 = vector.shape_cast %68 : vector<1x1x1x256xf32> to vector<1x256xf32>
    %70 = vector.shape_cast %67 : vector<1x256xf32> to vector<1x1x1x256xf32>
    tpu.vector_store %arg5[%c0_47, %c2_48, %c0_49, %c0_50], %70 {strides = array<i32>} : memref<1x3x1x256xf32, #tpu.memory_space<vmem>>, vector<1x1x1x256xf32>,
    return
  }
  func.func @transform_0(%arg0: i32, %arg1: i32) -> (i32, i32) {
    %c0_i32 = arith.constant 0 : i32
    %c0_i32_0 = arith.constant 0 : i32
    %c0_i32_1 = arith.constant 0 : i32
    return %c0_i32, %c0_i32_0 : i32, i32
  }
  func.func @transform_1(%arg0: i32, %arg1: i32) -> i32 {
    %c0_i32 = arith.constant 0 : i32
    %c0_i32_0 = arith.constant 0 : i32
    return %c0_i32 : i32
  }
  func.func @transform_2(%arg0: i32, %arg1: i32) -> (i32, i32, i32, i32) {
    %c0_i32 = arith.constant 0 : i32
    %c0_i32_0 = arith.constant 0 : i32
    %c0_i32_1 = arith.constant 0 : i32
    return %arg0, %c0_i32, %arg1, %c0_i32_0 : i32, i32, i32, i32
  }
  func.func @transform_3(%arg0: i32, %arg1: i32) -> (i32, i32, i32, i32) {
    %c0_i32 = arith.constant 0 : i32
    %c0_i32_0 = arith.constant 0 : i32
    %c0_i32_1 = arith.constant 0 : i32
    return %arg0, %c0_i32, %arg1, %c0_i32_0 : i32, i32, i32, i32
  }
}

</mosaic_0001>

<bundles_post_ra>
// kernel: tpu_custom_call.1
= control target key start
LH: loop header
LB: loop body
LE: loop exit
PB: predicated region body
PF: predicated region fallthrough
CT: control target
= control target key end

     0   :  { %s897_s0 = inlined_call_operand.hbm [shape: f32[3,4], index: 0, kind: input, shape index: {}]   ;;  %s898_s1 = inlined_call_operand.hbm [shape: f32[3], index: 1, kind: input, shape index: {}]   ;;  %s899_s2 = inlined_call_operand.hbm [shape: f32[2,4,1,256], index: 2, kind: input, shape index: {}]   ;;  %s900_s3 = inlined_call_operand.hbm [shape: f32[2,3,1,256], index: 3, kind: output, shape index: {}]  }
   0x1   :  { %901 = sst [smem:[#allocation14_spill]] %s897_s0 }
   0x2   :  { %8 = vsyncpa [#allocation5], 0 }
   0x3   :  { %9 = vsyncpa [#allocation7], 0 }
   0x4   :  { %10 = vsyncpa [#allocation3], 0 }
   0x5   :  { %12 = vsyncpa [#allocation3 + $0x1], 0 }
   0x6   :  { %13 = vsyncpa [#allocation4], 0 }
   0x7   :  { %15 = vsyncpa [#allocation4 + $0x1], 0  ;;  %s728_s12 = smov 0   ;;  %s730_s13 = smov 0  }
   0x8   :  { %s732_s14 = smov 0   ;;  %s734_s15 = smov 0  }
   0x9   :  { %s736_s16 = smov 0   ;;  %s738_s17 = smov 0  }
   0xa LB: > { %s429_s18 = sadd.s32 4294967295, %s700_s17   ;;  %s430_s19 = sadd.s32 4294967294, %s700_s17   ;;  %s700_s17 = sphi %s738_s17, %s21_s17   ;;  %s696_s16 = sphi %s736_s16, %s916_s16   ;;  %s692_s15 = sphi %s734_s15, %s915_s15   ;;  %s688_s14 = sphi %s732_s14, %s914_s14   ;;  %s684_s13 = sphi %s730_s13, %s913_s13   ;;  %s680_s12 = sphi %s728_s12, %s912_s12  }
   0xb   : > { %s84_s20 = sadd.s32 1, %s688_s14  ;;  %p91_p0 = scmp.ne.s32.totalorder %s688_s14, %s684_s13 }
   0xc   : > { %p92_p1 = scmp.eq.s32.totalorder %s700_s17, 0  ;;  %p97_p2 = scmp.ne.s32.totalorder %s684_s13, %s680_s12 }
   0xd   : > { %p766_p3 = scmp.eq.s32.totalorder %s429_s18, 0  ;;  %p123_p4 = scmp.eq.s32.totalorder %s429_s18, 1 }
   0xe   : > { %p770_p5 = por %p92_p1, %p91_p0  ;;  %p129_p6 = scmp.eq.s32.totalorder %s430_s19, 1 }
   0xf   : > { %p776_p7 = por %p766_p3, %p97_p2  ;;  %p780_p8 = por %p123_p4, %p91_p0 }
  0x10   : > { %p784_p9 = por %p129_p6, %p97_p2  ;;  %p431_p10 = scmp.ge.s32.totalorder %s700_s17, 1 }
  0x11   : > { %p136_p11 = scmp.lt.s32.totalorder %s700_s17, 3  ;;  %s907_s0 = sld [smem:[#allocation14_spill]] }
  0x12   : > { %p434_p13 = scmp.ge.s32.totalorder %s700_s17, 2  ;;  %p492_p0 = scmp.lt.s32.totalorder %s700_s17, 2 }
  0x13   : > { %p793_p12 = pnand %p431_p10, %p136_p11  ;;  %s158_s5 = sshll.u32 %s898_s1, 4  ;;  %s159_s5 = int_to_ptr.hbm [resolvable:$true] %s158_s5 }
  0x14   : > { %p806_p2 = pnand %p492_p0, %p770_p5  ;;  %s702_s7 = smov [#allocation2]  }
  0x15   : > { %p475_p1 = pneg %p793_p12  ;;  %s703_s8 = smov [#allocation6]  }
  0x16   : > { %s33_s9 = sadd.s32 1, %s696_s16  ;;  %s169_s10 = sand.u32 1, %s688_s14  }
  0x17   : > { %s148_s28 = sshll.u32 %s907_s0, 4  ;;  %p476_p4 = pnand %p475_p1, %p766_p3  ;;  %s149_s28 = int_to_ptr.hbm [resolvable:$true] %s148_s28 }
  0x18   : > { %p35_p6 = scmp.ge.s32.totalorder %s33_s9, 2  ;;  %s435_s11 = sshll.u32 %s169_s10, 3 }
  0x19   : > { %478 = dma.hbm_to_smem (!%p476_p4), %s149_s28, 64, %s702_s7, [#allocation5]  }
  0x1a   : > { %481 = dma.hbm_to_smem (!%p476_p4), %s159_s5, 16, %s703_s8, [#allocation7]  }
  0x1b   : > { %s436_s18 = sshll.u32 %s696_s16, 3  ;;  %s918_s9 = smov (%p35_p6, %s33_s9), 0 }
  0x1c   : > { %s179_s26 = scalar_lea.hbm %s899_s2, %s436_s18  ;;  %s79_s27 = ssub.s32 %s696_s16, %s918_s9 }
  0x1d   : > { %s180_s30 = sshll.u32 %s179_s26, 4  ;;  %p82_p5 = scmp.eq.s32.totalorder %s79_s27, 0  ;;  %s181_s30 = int_to_ptr.hbm [resolvable:$true] %s180_s30 }
  0x1e   : > { %s173_s28 = scalar_lea.vmem [#allocation8], %s435_s11  ;;  %s170_s7 = scalar_lea.sflag [#allocation3], %s169_s10 }
  0x1f   : > { %s182_s4 = sshll.u32 %s173_s28, 4  ;;  %s704_s8 = smov 32   ;;  %s183_s4 = int_to_ptr.vmem [resolvable:$true] %s182_s4 }
  0x20   : > { %s825_s5 = scalar_select %p82_p5, %s688_s14, %s84_s20  }
  0x21   : > { %s705_s0 = smov 2   ;;  %194 = sbr.rel (%p793_p12) target bundleno = 78 (0x4e), region = 32 }
  0x22   : > { %485 = dma.hbm_to_vmem [thread:$0]  (!%p806_p2), %s181_s30, 128, %s183_s4, %s170_s7, %s704_s8, %s704_s8, %s705_s0  }
  0x26   : > { %663 = dma.done.wait (%p766_p3), [#allocation5], 64  }
  0x27   : > { %665 = vsyncadd (%p766_p3), [#allocation5], 4294967232 }
  0x28   : > { %667 = dma.done.wait (%p766_p3), [#allocation7], 16  }
  0x29   : > { %669 = vsyncadd (%p766_p3), [#allocation7], 4294967280  ;;  %s840_s20 = sand.u32 1, %s684_s13  }
  0x2a   : > { %s440_s0 = sshll.u32 %s840_s20, 3  ;;  %s207_s29 = scalar_lea.sflag [#allocation3], %s840_s20 }
  0x2b   : > { %s210_s6 = scalar_lea.vmem [#allocation8], %s440_s0 }
  0x2c   : > { %671 = dma.done.wait (%p776_p7), %s207_s29, 128  }
  0x2d   : > { %673 = vsyncadd (%p776_p7), %s207_s29, 4294967168 }
  0x2e   : > { %216 = sfence }
  0x2f   : > { %s242_s10 = sld [smem:[#allocation2]]  ;;  %v235_v0 = vld [vmem:[%s210_s6] sm:$0x3]  ;;  %v441_v1 = vld [vmem:[%s210_s6 + $0x2] sm:$0x3]  ;;  %s461_s28 = smul.u32 6, %s840_s20  ;;  %v260_v13 = vlaneseq }
  0x30   : > { %s245_s11 = sld [smem:[#allocation6]]  ;;  %v442_v3 = vld [vmem:[%s210_s6 + $0x4] sm:$0x3]  ;;  %v443_v6 = vld [vmem:[%s210_s6 + $0x6] sm:$0x3]  ;;  %s462_s6 = smul.u32 6, %s692_s15 }
  0x31   : > { %s444_s18 = sld [smem:[#allocation2 + $0x1]]  ;;  %vm849_vm0 = vcmp.lt.s32.totalorder %v260_v13, 256 }
  0x32   : > { %s445_s21 = sld [smem:[#allocation2 + $0x2]] }
  0x33   : > { %s446_s19 = sld [smem:[#allocation2 + $0x3]] }
  0x34   : > { %s447_s22 = sld [smem:[#allocation2 + $0x80]] }
  0x35   : > { %v243_v2 = vstv %s242_s10  ;;  %s448_s26 = sld [smem:[#allocation6 + $0x1]]  ;;  %s234_s10 = scalar_lea.vmem [#allocation9], %s461_s28 }
  0x36   : > { %v244_v4 = vmul.f32 %v243_v2, %v235_v0  ;;  %v246_v5 = vstv %s245_s11  ;;  %s449_s27 = sld [smem:[#allocation2 + $0x81]]  ;;  %s319_s15 = sshll.u32 %s234_s10, 4  ;;  %s320_s15 = int_to_ptr.vmem [resolvable:$true] %s319_s15 }
  0x37   : > { %v249_v7 = vstv %s444_s18  ;;  %s450_s23 = sld [smem:[#allocation2 + $0x82]]  ;;  %s630_s28 = scalar_lea.hbm %s900_s3, 12 }
  0x38   : > { %v247_v8 = vadd.f32 %v246_v5, %v244_v4  ;;  %v250_v9 = vmul.f32 %v441_v1, %v249_v7  ;;  %v253_v10 = vstv %s445_s21  ;;  %s451_s30 = sld [smem:[#allocation2 + $0x83]]  ;;  %s318_s21 = scalar_lea.hbm %s900_s3, %s462_s6 }
  0x39   : > { %v254_v11 = vmul.f32 %v442_v3, %v253_v10  ;;  %v257_v12 = vstv %s446_s19  ;;  %s453_s4 = sld [smem:[#allocation2 + $0x100]]  ;;  %s321_s19 = sshll.u32 %s318_s21, 4  ;;  %s322_s19 = int_to_ptr.hbm [resolvable:$true] %s321_s19 }
  0x3a   : > { %v251_v14 = vadd.f32 %v250_v9, %v247_v8  ;;  %v258_v15 = vmul.f32 %v443_v6, %v257_v12  ;;  %v266_v16 = vstv %s447_s22  ;;  %s454_s7 = sld [smem:[#allocation6 + $0x2]]  ;;  %s306_s22 = scalar_lea.sflag [#allocation4], %s840_s20 }
  0x3b   : > { %v267_v17 = vmul.f32 %v266_v16, %v235_v0  ;;  %v269_v18 = vstv %s448_s26  ;;  %s455_s8 = sld [smem:[#allocation2 + $0x101]]  ;;  %s624_s26 = sshra.s32 %s322_s19, 4  ;;  %s625_s26 = int_to_ptr.hbm [resolvable:$true] %s624_s26 }
  0x3c   : > { %v255_v19 = vadd.f32 %v254_v11, %v251_v14  ;;  %v272_v20 = vstv %s449_s27  ;;  %s456_s0 = sld [smem:[#allocation2 + $0x102]]  ;;  %s626_s27 = scalar_lea.hbm %s625_s26, 6 }
  0x3d   : > { %v270_v22 = vadd.f32 %v269_v18, %v267_v17  ;;  %v273_v23 = vmul.f32 %v441_v1, %v272_v20  ;;  %v276_v24 = vstv %s450_s23  ;;  %s457_s29 = sld [smem:[#allocation2 + $0x103]]  ;;  %p627_p3 = scmp.ne.s32.totalorder %s625_s26, %s626_s27 }
  0x3e   : > { %v259_v25 = vadd.f32 %v258_v15, %v255_v19  ;;  %v277_v26 = vmul.f32 %v442_v3, %v276_v24  ;;  %v280_v27 = vstv %s451_s30  ;;  %p631_p11 = scmp.lt.s32.totalorder %s625_s26, %s900_s3  ;;  %p632_p12 = scmp.lt.s32.totalorder %s630_s28, %s626_s27 }
  0x3f   : > { %v274_v28 = vadd.f32 %v273_v23, %v270_v22  ;;  %v281_v29 = vmul.f32 %v443_v6, %v280_v27  ;;  %v286_v30 = vstv %s453_s4  ;;  %p628_p7 = pnand %p627_p3, %p780_p8 }
  0x40   : > { %264 = vst.msk [vmem:[%s234_s10] sm:$0x3] %vm849_vm0, %v259_v25  ;;  %v287_v31 = vmul.f32 %v286_v30, %v235_v0  ;;  %v289_v32 = vstv %s454_s7  ;;  %p633_p0 = por %p632_p12, %p631_p11 }
  0x41   : > { %v278_v33 = vadd.f32 %v277_v26, %v274_v28  ;;  %v292_v34 = vstv %s455_s8  ;;  %p629_p10 = pneg %p628_p7 }
  0x42   : > { %v290_v35 = vadd.f32 %v289_v32, %v287_v31  ;;  %v293_v36 = vmul.f32 %v441_v1, %v292_v34  ;;  %v296_v37 = vstv %s456_s0 }
  0x43   : > { %v282_v38 = vadd.f32 %v281_v29, %v278_v33  ;;  %v297_v39 = vmul.f32 %v442_v3, %v296_v37  ;;  %v300_v40 = vstv %s457_s29  ;;  %p634_p1 = pnand %p633_p0, %p629_p10 }
  0x44   : > { %v294_v41 = vadd.f32 %v293_v36, %v290_v35  ;;  %v301_v42 = vmul.f32 %v443_v6, %v300_v40 }
  0x45   : > { %452 = vst.msk [vmem:[%s234_s10 + $0x2] sm:$0x3] %vm849_vm0, %v282_v38 }
  0x46   : > { %v298_v43 = vadd.f32 %v297_v39, %v294_v41 }
  0x48   : > { %v302_v44 = vadd.f32 %v301_v42, %v298_v43 }
  0x4a   : > { %458 = vst.msk [vmem:[%s234_s10 + $0x4] sm:$0x3] %vm849_vm0, %v302_v44 }
  0x4b   : > { %637 = shalt.err (!%p634_p1)
}
  0x4c   : > { %s706_s20 = smov 32   ;;  %s707_s8 = smov 2  }
  0x4d   : > { %473 = dma.vmem_to_hbm [thread:$0]  (%p780_p8), %s320_s15, 96, %s322_s19, %s306_s22, %s706_s20, %s706_s20, %s707_s8  }
  0x4e PF: > { %s336_s0 = sand.u32 1, %s680_s12   ;;  %p487_p2 = pnand %p434_p13, %p784_p9 }
  0x4f   : > { %s337_s29 = scalar_lea.sflag [#allocation4], %s336_s0 }
  0x50   : > { %p488_p4 = pneg %p487_p2 }
  0x52   : > { %675 = dma.done.wait (%p488_p4), %s337_s29, 96  }
  0x53   : > { %677 = vsyncadd (%p488_p4), %s337_s29, 4294967200  ;;  %s21_s17 = sadd.s32 1, %s700_s17   ;;  %s912_s12 = smov %s684_s13 }
  0x54   : > { %p18_p6 = scmp.ge.s32.totalorder %s21_s17, 4   ;;  %s913_s13 = smov %s688_s14 }
  0x55   : > { %s914_s14 = smov %s825_s5  ;;  %s915_s15 = smov %s696_s16 }
  0x56   : > { %s916_s16 = smov %s918_s9  ;;  %20 = sbr.rel (!%p18_p6) target bundleno = 10 (0xa), region = 91 }
  0x5b   :  { %343 = vsyncpa [#allocation3], 1 }
  0x5c   :  { %345 = vsyncpa [#allocation3 + $0x1], 1 }
  0x5d   :  { %346 = vsyncpa [#allocation4], 1 }
  0x5e   :  { %348 = vsyncpa [#allocation4 + $0x1], 1 }
  0x5f   :  { %349 = vsyncpa [#allocation5], 1 }
  0x60   :  { %351 = vsyncpa [#allocation5 + $0x1], 1 }
  0x61   :  { %352 = vsyncpa [#allocation7], 1 }

</bundles_post_ra>
